<compile_context>
chip_gen: v7x
topology: tpu7x:2x2x1
jax: 0.10.0
libtpu: 0.0.40
codegen_flags: <defaults>
</compile_context>

<pallas_src>
import math

import numpy as np

import jax
import jax.numpy as jnp
from jax.experimental import pallas as pl
from jax.experimental.pallas import tpu as pltpu


def _fspecial_gauss_1d(size, sigma):
    """Deterministic 1-D Gaussian window (same math as the torch version)."""
    coords = [float(i) - float(size // 2) for i in range(size)]
    g = [math.exp(-(c ** 2) / (2.0 * sigma ** 2)) for c in coords]
    s = sum(g)
    return [v / s for v in g]


def _banded_filter_matrices(H, W, win):
    """Banded matrices implementing the separable 'valid' correlation.

    W-pass:  t[., j]  = sum_k a[., j+k] * win[k]   ->  a @ Gw,  Gw: (W, Wout)
    H-pass:  r[o, .]  = sum_k t[o+k, .] * win[k]   ->  Gh @ t,  Gh: (Hout, H)
    """
    ws = len(win)
    Hout, Wout = H - ws + 1, W - ws + 1
    Gw = np.zeros((W, Wout), np.float32)
    for j in range(Wout):
        for k in range(ws):
            Gw[j + k, j] = win[k]
    Gh = np.zeros((Hout, H), np.float32)
    for o in range(Hout):
        for k in range(ws):
            Gh[o, o + k] = win[k]
    return jnp.asarray(Gw), jnp.asarray(Gh)


def _make_ssim_kernel(Bp, H, W, ws, data_range, cs_only=False):
    Hout, Wout = H - ws + 1, W - ws + 1
    K1, K2 = 0.01, 0.03
    C1 = (K1 * data_range) ** 2
    C2 = (K2 * data_range) ** 2
    inv_area = 1.0 / float(Hout * Wout)

    def _recip(x):
        # EUP approximate reciprocal + one Newton step (VPU): ~f32-exact,
        # avoids the expensive VALU divide sequence.
        r = pl.reciprocal(x, approx=True)
        return r * (2.0 - x * r)

    def kernel(x_ref, y_ref, gw_ref, gh_ref, o_ref):
        x = x_ref[...].astype(jnp.float32)          # (Bp, H, W)
        y = y_ref[...].astype(jnp.float32)
        gw = gw_ref[...]                            # (W, Wout)
        # Hoisted once per grid step, shared by all five filter calls.
        gh_b = jnp.broadcast_to(gh_ref[...][None, :, :], (Bp, Hout, H))

        def gfilt(a):
            # Separable Gaussian 'valid' convolution entirely on the MXU.
            # W-pass (lanes): one 2-D matmul over all planes/rows at once.
            t = jnp.dot(a.reshape(Bp * H, W), gw,
                        preferred_element_type=jnp.float32)
            t = t.reshape(Bp, H, Wout)
            # H-pass (sublanes): batched (Hout, H) @ (H, Wout).
            return jnp.einsum('boh,bhw->bow', gh_b, t,
                              preferred_element_type=jnp.float32)

        mu1 = gfilt(x)                              # (Bp, Hout, Wout)
        mu2 = gfilt(y)
        gxx = gfilt(x * x)
        gyy = gfilt(y * y)
        gxy = gfilt(x * y)

        mu1_sq = mu1 * mu1
        mu2_sq = mu2 * mu2
        mu1_mu2 = mu1 * mu2
        sigma1_sq = gxx - mu1_sq
        sigma2_sq = gyy - mu2_sq
        sigma12 = gxy - mu1_mu2

        cs_map = (2.0 * sigma12 + C2) * _recip(sigma1_sq + sigma2_sq + C2)
        if cs_only:
            ssim_map = cs_map
        else:
            ssim_map = (2.0 * mu1_mu2 + C1) * _recip(mu1_sq + mu2_sq + C1) * cs_map

        # Valid region is already exact (Hout, Wout): plain mean per plane.
        sums = jnp.sum(ssim_map, axis=2, keepdims=True)   # (Bp, Hout, 1)
        sums = jnp.sum(sums, axis=1, keepdims=True)       # (Bp, 1, 1)
        means = sums[:, 0, :] * inv_area                   # (Bp, 1)

        # Lane-dense output slab; the wrapper reads [:, :, 0].
        o_ref[...] = jnp.broadcast_to(
            means[None, :, :], (1, Bp, 128)).astype(o_ref.dtype)

    return kernel


def _vmem_budget():
    """Generation-aware VMEM limit + working-set budget."""
    try:
        cap = int(pltpu.get_tpu_info().vmem_capacity_bytes)
    except Exception:
        cap = 64 * 1024 * 1024          # conservative fallback (v7x size)
    # Leave headroom for Mosaic internal scratch + double-buffered DMA windows:
    #   128 MiB (v5e/v6e) -> limit ~109 MiB, budget ~65 MiB
    #    64 MiB (v7x)     -> limit ~54 MiB,  budget ~33 MiB
    limit = int(min(cap - 8 * 1024 * 1024, int(cap * 0.85)))
    budget = int(limit * 0.6)
    return budget, limit


def _choose_block_planes(P, H, W, itemsize, budget_bytes):
    """Largest divisor of P whose live set fits the VMEM budget.

    No artificial plane cap and G=1 is allowed (single-step grids are fine on
    1-TC chips; larger Bp amortizes the ~0.35 us/step pipeline overhead and
    issues bigger DMAs).
    """
    # Live set per plane: ~22 f32 planes (x, y, gfilt temporaries, the five
    # filtered maps and the ssim elementwise temps) + 2 inputs x 2 pipeline
    # buffers in the original dtype.
    per_plane = H * W * (22 * 4 + 4 * int(itemsize))
    cap = max(1, budget_bytes // max(per_plane, 1))
    best = 1
    for d in range(1, P + 1):
        if P % d == 0 and d <= cap:
            best = d
    return best
    # TODO(synk): on v7x (2 TensorCores) prefer divisors giving an even G for
    # balanced megacore sharding once a reliable core-count query is available.


def ssim_pallas(X, Y, win_size=11, win_sigma=1.5, data_range=255.0,
                size_average=True):
    """SSIM of two NCHW image batches via a Pallas TPU kernel."""
    X = jnp.asarray(X)
    Y = jnp.asarray(Y)
    assert X.shape == Y.shape and X.ndim == 4
    assert win_size % 2 == 1
    N, C, H, W = X.shape
    assert H >= win_size and W >= win_size
    P = N * C
    ws = win_size
    Hout, Wout = H - ws + 1, W - ws + 1

    win = _fspecial_gauss_1d(win_size, win_sigma)
    Gw, Gh = _banded_filter_matrices(H, W, win)

    # Keep original dtype for the HBM->VMEM DMA; cast to f32 inside the kernel.
    Xf = X.reshape(P, H, W)
    Yf = Y.reshape(P, H, W)

    budget, vmem_limit = _vmem_budget()
    Bp = _choose_block_planes(P, H, W, Xf.dtype.itemsize, budget)
    G = P // Bp

    kernel = _make_ssim_kernel(Bp, H, W, ws, float(data_range))

    out = pl.pallas_call(
        kernel,
        out_shape=jax.ShapeDtypeStruct((G, Bp, 128), jnp.float32),
        grid_spec=pltpu.PrefetchScalarGridSpec(
            num_scalar_prefetch=0,
            grid=(G,),
            in_specs=[
                pl.BlockSpec((Bp, H, W), lambda i: (i, 0, 0)),
                pl.BlockSpec((Bp, H, W), lambda i: (i, 0, 0)),
                pl.BlockSpec((W, Wout), lambda i: (0, 0)),     # banded W filter
                pl.BlockSpec((Hout, H), lambda i: (0, 0)),     # banded H filter
            ],
            out_specs=pl.BlockSpec((1, Bp, 128), lambda i: (i, 0, 0)),
        ),
        compiler_params=pltpu.CompilerParams(
            dimension_semantics=("parallel",),
            vmem_limit_bytes=int(vmem_limit)),
    )(Xf, Yf, Gw, Gh)

    ssim_per_channel = out[:, :, 0].reshape(N, C)   # == _ssim_per_channel result
    if size_average:
        return ssim_per_channel.mean()
    return ssim_per_channel.mean(-1)


def _ssim_reference(X, Y, win_size=11, win_sigma=1.5, data_range=255.0,
                    size_average=True):
    """Pure-JAX reference (same math, no Pallas) for a correctness check."""
    win = jnp.asarray(_fspecial_gauss_1d(win_size, win_sigma), jnp.float32)
    N, C, H, W = X.shape
    K1, K2 = 0.01, 0.03
    C1 = (K1 * data_range) ** 2
    C2 = (K2 * data_range) ** 2

    def gfilt(a):  # a: (N, C, H, W)
        Wout = W - win_size + 1
        Hout = H - win_size + 1
        acc = jnp.zeros(a.shape[:2] + (H, Wout), jnp.float32)
        for k in range(win_size):
            acc = acc + win[k] * a[..., :, k:k + Wout]
        acc2 = jnp.zeros(a.shape[:2] + (Hout, Wout), jnp.float32)
        for k in range(win_size):
            acc2 = acc2 + win[k] * acc[..., k:k + Hout, :]
        return acc2

    Xf = X.astype(jnp.float32)
    Yf = Y.astype(jnp.float32)
    mu1, mu2 = gfilt(Xf), gfilt(Yf)
    s1 = gfilt(Xf * Xf) - mu1 * mu1
    s2 = gfilt(Yf * Yf) - mu2 * mu2
    s12 = gfilt(Xf * Yf) - mu1 * mu2
    cs = (2 * s12 + C2) / (s1 + s2 + C2)
    m = (2 * mu1 * mu2 + C1) / (mu1 * mu1 + mu2 * mu2 + C1) * cs
    val = m.mean(axis=(-2, -1))
    return val.mean() if size_average else val.mean(-1)


if __name__ == "__main__":
    key = jax.random.PRNGKey(0)
    kx, ky = jax.random.split(key)
    N, C, H, W = 2, 3, 16, 16          # channel=3 matches the module default
    X = jax.random.uniform(kx, (N, C, H, W), jnp.float32) * 255.0
    Y = jax.random.uniform(ky, (N, C, H, W), jnp.float32) * 255.0

    result = ssim_pallas(X, Y, win_size=11, win_sigma=1.5,
                         data_range=255.0, size_average=True)
    result = jax.block_until_ready(result)

    ref = _ssim_reference(X, Y, win_size=11, win_sigma=1.5,
                          data_range=255.0, size_average=True)
    assert jnp.allclose(result, ref, atol=1e-4, rtol=1e-4), (result, ref)

    print("KERNEL_OK")
</pallas_src>

<mosaic_0001>
module attributes {stable_mosaic.version = 11 : i64} {
  func.func @kernel(%arg0: i32, %arg1: memref<6x16x16xf32, #tpu.memory_space<vmem>>, %arg2: memref<6x16x16xf32, #tpu.memory_space<vmem>>, %arg3: memref<16x6xf32, #tpu.memory_space<vmem>>, %arg4: memref<6x16xf32, #tpu.memory_space<vmem>>, %arg5: memref<1x6x128xf32, #tpu.memory_space<vmem>>) attributes {dimension_semantics = [#tpu.dimension_semantics<parallel>], iteration_bounds = array<i64: 1>, scalar_prefetch = 0 : i64, scratch_operands = 0 : i64, tpu.core_type = #tpu.core_type<tc>, window_params = [{transform_indices = @transform_0, window_bounds = array<i64: 6, 16, 16>}, {transform_indices = @transform_1, window_bounds = array<i64: 6, 16, 16>}, {pipeline_mode = #tpu.pipeline_mode<synchronous>, transform_indices = @transform_2, window_bounds = array<i64: 16, 6>}, {pipeline_mode = #tpu.pipeline_mode<synchronous>, transform_indices = @transform_3, window_bounds = array<i64: 6, 16>}, {transform_indices = @transform_4, window_bounds = array<i64: 1, 6, 128>}]} {
    %c0 = arith.constant 0 : index
    %c0_0 = arith.constant 0 : index
    %c0_1 = arith.constant 0 : index
    %0 = vector.load %arg1[%c0, %c0_0, %c0_1] : memref<6x16x16xf32, #tpu.memory_space<vmem>>, vector<6x16x16xf32>
    %c0_2 = arith.constant 0 : index
    %c0_3 = arith.constant 0 : index
    %c0_4 = arith.constant 0 : index
    %1 = vector.load %arg2[%c0_2, %c0_3, %c0_4] : memref<6x16x16xf32, #tpu.memory_space<vmem>>, vector<6x16x16xf32>
    %c0_5 = arith.constant 0 : index
    %c0_6 = arith.constant 0 : index
    %2 = vector.load %arg3[%c0_5, %c0_6] : memref<16x6xf32, #tpu.memory_space<vmem>>, vector<16x6xf32>
    %c0_7 = arith.constant 0 : index
    %c0_8 = arith.constant 0 : index
    %3 = vector.load %arg4[%c0_7, %c0_8] : memref<6x16xf32, #tpu.memory_space<vmem>>, vector<6x16xf32>
    %4 = vector.shape_cast %3 : vector<6x16xf32> to vector<1x6x16xf32>
    %5 = vector.shape_cast %4 : vector<1x6x16xf32> to vector<1x6x16xf32>
    %6 = vector.broadcast %5 : vector<1x6x16xf32> to vector<6x6x16xf32>
    %7 = vector.shape_cast %0 : vector<6x16x16xf32> to vector<96x16xf32>
    %cst = arith.constant dense<0.000000e+00> : vector<96x6xf32>
    %8 = tpu.matmul %7, %2, %cst {dimension_numbers = #tpu.dot_dimension_numbers<[1], [0], [0], [1], [0, 0, 1, 1], [], []>} : vector<96x16xf32>, vector<16x6xf32>, vector<96x6xf32> -> vector<96x6xf32>
    %9 = vector.shape_cast %8 : vector<96x6xf32> to vector<6x16x6xf32>
    "tpu.trace_start"() <{level = 10 : i32, message = "boh,bhw->bow"}> : () -> ()
    %cst_9 = arith.constant dense<0.000000e+00> : vector<6x6x6xf32>
    %10 = tpu.matmul %6, %9, %cst_9 {dimension_numbers = #tpu.dot_dimension_numbers<[2], [1], [1], [2], [0, 0, 0, 1, 1, 2], [0], [0]>} : vector<6x6x16xf32>, vector<6x16x6xf32>, vector<6x6x6xf32> -> vector<6x6x6xf32>
    "tpu.trace_stop"() : () -> ()
    %11 = vector.shape_cast %1 : vector<6x16x16xf32> to vector<96x16xf32>
    %cst_10 = arith.constant dense<0.000000e+00> : vector<96x6xf32>
    %12 = tpu.matmul %11, %2, %cst_10 {dimension_numbers = #tpu.dot_dimension_numbers<[1], [0], [0], [1], [0, 0, 1, 1], [], []>} : vector<96x16xf32>, vector<16x6xf32>, vector<96x6xf32> -> vector<96x6xf32>
    %13 = vector.shape_cast %12 : vector<96x6xf32> to vector<6x16x6xf32>
    "tpu.trace_start"() <{level = 10 : i32, message = "boh,bhw->bow"}> : () -> ()
    %cst_11 = arith.constant dense<0.000000e+00> : vector<6x6x6xf32>
    %14 = tpu.matmul %6, %13, %cst_11 {dimension_numbers = #tpu.dot_dimension_numbers<[2], [1], [1], [2], [0, 0, 0, 1, 1, 2], [0], [0]>} : vector<6x6x16xf32>, vector<6x16x6xf32>, vector<6x6x6xf32> -> vector<6x6x6xf32>
    "tpu.trace_stop"() : () -> ()
    %15 = arith.mulf %0, %0 : vector<6x16x16xf32>
    %16 = vector.shape_cast %15 : vector<6x16x16xf32> to vector<96x16xf32>
    %cst_12 = arith.constant dense<0.000000e+00> : vector<96x6xf32>
    %17 = tpu.matmul %16, %2, %cst_12 {dimension_numbers = #tpu.dot_dimension_numbers<[1], [0], [0], [1], [0, 0, 1, 1], [], []>} : vector<96x16xf32>, vector<16x6xf32>, vector<96x6xf32> -> vector<96x6xf32>
    %18 = vector.shape_cast %17 : vector<96x6xf32> to vector<6x16x6xf32>
    "tpu.trace_start"() <{level = 10 : i32, message = "boh,bhw->bow"}> : () -> ()
    %cst_13 = arith.constant dense<0.000000e+00> : vector<6x6x6xf32>
    %19 = tpu.matmul %6, %18, %cst_13 {dimension_numbers = #tpu.dot_dimension_numbers<[2], [1], [1], [2], [0, 0, 0, 1, 1, 2], [0], [0]>} : vector<6x6x16xf32>, vector<6x16x6xf32>, vector<6x6x6xf32> -> vector<6x6x6xf32>
    "tpu.trace_stop"() : () -> ()
    %20 = arith.mulf %1, %1 : vector<6x16x16xf32>
    %21 = vector.shape_cast %20 : vector<6x16x16xf32> to vector<96x16xf32>
    %cst_14 = arith.constant dense<0.000000e+00> : vector<96x6xf32>
    %22 = tpu.matmul %21, %2, %cst_14 {dimension_numbers = #tpu.dot_dimension_numbers<[1], [0], [0], [1], [0, 0, 1, 1], [], []>} : vector<96x16xf32>, vector<16x6xf32>, vector<96x6xf32> -> vector<96x6xf32>
    %23 = vector.shape_cast %22 : vector<96x6xf32> to vector<6x16x6xf32>
    "tpu.trace_start"() <{level = 10 : i32, message = "boh,bhw->bow"}> : () -> ()
    %cst_15 = arith.constant dense<0.000000e+00> : vector<6x6x6xf32>
    %24 = tpu.matmul %6, %23, %cst_15 {dimension_numbers = #tpu.dot_dimension_numbers<[2], [1], [1], [2], [0, 0, 0, 1, 1, 2], [0], [0]>} : vector<6x6x16xf32>, vector<6x16x6xf32>, vector<6x6x6xf32> -> vector<6x6x6xf32>
    "tpu.trace_stop"() : () -> ()
    %25 = arith.mulf %0, %1 : vector<6x16x16xf32>
    %26 = vector.shape_cast %25 : vector<6x16x16xf32> to vector<96x16xf32>
    %cst_16 = arith.constant dense<0.000000e+00> : vector<96x6xf32>
    %27 = tpu.matmul %26, %2, %cst_16 {dimension_numbers = #tpu.dot_dimension_numbers<[1], [0], [0], [1], [0, 0, 1, 1], [], []>} : vector<96x16xf32>, vector<16x6xf32>, vector<96x6xf32> -> vector<96x6xf32>
    %28 = vector.shape_cast %27 : vector<96x6xf32> to vector<6x16x6xf32>
    "tpu.trace_start"() <{level = 10 : i32, message = "boh,bhw->bow"}> : () -> ()
    %cst_17 = arith.constant dense<0.000000e+00> : vector<6x6x6xf32>
    %29 = tpu.matmul %6, %28, %cst_17 {dimension_numbers = #tpu.dot_dimension_numbers<[2], [1], [1], [2], [0, 0, 0, 1, 1, 2], [0], [0]>} : vector<6x6x16xf32>, vector<6x16x6xf32>, vector<6x6x6xf32> -> vector<6x6x6xf32>
    "tpu.trace_stop"() : () -> ()
    %30 = arith.mulf %10, %10 : vector<6x6x6xf32>
    %31 = arith.mulf %14, %14 : vector<6x6x6xf32>
    %32 = arith.mulf %10, %14 : vector<6x6x6xf32>
    %33 = arith.subf %19, %30 : vector<6x6x6xf32>
    %34 = arith.subf %24, %31 : vector<6x6x6xf32>
    %35 = arith.subf %29, %32 : vector<6x6x6xf32>
    %cst_18 = arith.constant 2.000000e+00 : f32
    %36 = vector.broadcast %cst_18 : f32 to vector<6x6x6xf32>
    %37 = arith.mulf %36, %35 : vector<6x6x6xf32>
    %cst_19 = arith.constant 5.852250e+01 : f32
    %38 = vector.broadcast %cst_19 : f32 to vector<6x6x6xf32>
    %39 = arith.addf %37, %38 : vector<6x6x6xf32>
    %40 = arith.addf %33, %34 : vector<6x6x6xf32>
    %cst_20 = arith.constant 5.852250e+01 : f32
    %41 = vector.broadcast %cst_20 : f32 to vector<6x6x6xf32>
    %42 = arith.addf %40, %41 : vector<6x6x6xf32>
    %43 = tpu.reciprocal %42 {approx = true} : vector<6x6x6xf32> -> vector<6x6x6xf32>
    %44 = arith.mulf %42, %43 : vector<6x6x6xf32>
    %cst_21 = arith.constant 2.000000e+00 : f32
    %45 = vector.broadcast %cst_21 : f32 to vector<6x6x6xf32>
    %46 = arith.subf %45, %44 : vector<6x6x6xf32>
    %47 = arith.mulf %43, %46 : vector<6x6x6xf32>
    %48 = arith.mulf %39, %47 : vector<6x6x6xf32>
    %cst_22 = arith.constant 2.000000e+00 : f32
    %49 = vector.broadcast %cst_22 : f32 to vector<6x6x6xf32>
    %50 = arith.mulf %49, %32 : vector<6x6x6xf32>
    %cst_23 = arith.constant 6.502500e+00 : f32
    %51 = vector.broadcast %cst_23 : f32 to vector<6x6x6xf32>
    %52 = arith.addf %50, %51 : vector<6x6x6xf32>
    %53 = arith.addf %30, %31 : vector<6x6x6xf32>
    %cst_24 = arith.constant 6.502500e+00 : f32
    %54 = vector.broadcast %cst_24 : f32 to vector<6x6x6xf32>
    %55 = arith.addf %53, %54 : vector<6x6x6xf32>
    %56 = tpu.reciprocal %55 {approx = true} : vector<6x6x6xf32> -> vector<6x6x6xf32>
    %57 = arith.mulf %55, %56 : vector<6x6x6xf32>
    %cst_25 = arith.constant 2.000000e+00 : f32
    %58 = vector.broadcast %cst_25 : f32 to vector<6x6x6xf32>
    %59 = arith.subf %58, %57 : vector<6x6x6xf32>
    %60 = arith.mulf %56, %59 : vector<6x6x6xf32>
    %61 = arith.mulf %52, %60 : vector<6x6x6xf32>
    %62 = arith.mulf %61, %48 : vector<6x6x6xf32>
    %cst_26 = arith.constant dense<0.000000e+00> : vector<6x6xf32>
    %63 = vector.multi_reduction <add>, %62, %cst_26 [2] : vector<6x6x6xf32> to vector<6x6xf32>
    %64 = vector.shape_cast %63 : vector<6x6xf32> to vector<6x6x1xf32>
    %cst_27 = arith.constant dense<0.000000e+00> : vector<6x1xf32>
    %65 = vector.multi_reduction <add>, %64, %cst_27 [1] : vector<6x6x1xf32> to vector<6x1xf32>
    %66 = vector.shape_cast %65 : vector<6x1xf32> to vector<6x1x1xf32>
    %67 = vector.shape_cast %66 : vector<6x1x1xf32> to vector<6x1xf32>
    %cst_28 = arith.constant 0.027777778 : f32
    %68 = vector.broadcast %cst_28 : f32 to vector<6x1xf32>
    %69 = arith.mulf %67, %68 : vector<6x1xf32>
    %70 = vector.shape_cast %69 : vector<6x1xf32> to vector<1x6x1xf32>
    %71 = vector.shape_cast %70 : vector<1x6x1xf32> to vector<1x6x1xf32>
    %72 = vector.broadcast %71 : vector<1x6x1xf32> to vector<1x6x128xf32>
    %c0_29 = arith.constant 0 : index
    %c0_30 = arith.constant 0 : index
    %c0_31 = arith.constant 0 : index
    %73 = vector.load %arg5[%c0_29, %c0_30, %c0_31] : memref<1x6x128xf32, #tpu.memory_space<vmem>>, vector<1x6x128xf32>
    tpu.vector_store %arg5[%c0_29, %c0_30, %c0_31], %72 {strides = array<i32>} : memref<1x6x128xf32, #tpu.memory_space<vmem>>, vector<1x6x128xf32>,
    return
  }
  func.func @transform_0(%arg0: i32) -> (i32, i32, i32) {
    %c0_i32 = arith.constant 0 : i32
    %c0_i32_0 = arith.constant 0 : i32
    %c0_i32_1 = arith.constant 0 : i32
    return %arg0, %c0_i32, %c0_i32_0 : i32, i32, i32
  }
  func.func @transform_1(%arg0: i32) -> (i32, i32, i32) {
    %c0_i32 = arith.constant 0 : i32
    %c0_i32_0 = arith.constant 0 : i32
    %c0_i32_1 = arith.constant 0 : i32
    return %arg0, %c0_i32, %c0_i32_0 : i32, i32, i32
  }
  func.func @transform_2(%arg0: i32) -> (i32, i32) {
    %c0_i32 = arith.constant 0 : i32
    %c0_i32_0 = arith.constant 0 : i32
    %c0_i32_1 = arith.constant 0 : i32
    return %c0_i32, %c0_i32_0 : i32, i32
  }
  func.func @transform_3(%arg0: i32) -> (i32, i32) {
    %c0_i32 = arith.constant 0 : i32
    %c0_i32_0 = arith.constant 0 : i32
    %c0_i32_1 = arith.constant 0 : i32
    return %c0_i32, %c0_i32_0 : i32, i32
  }
  func.func @transform_4(%arg0: i32) -> (i32, i32, i32) {
    %c0_i32 = arith.constant 0 : i32
    %c0_i32_0 = arith.constant 0 : i32
    %c0_i32_1 = arith.constant 0 : i32
    return %arg0, %c0_i32, %c0_i32_0 : i32, i32, i32
  }
}

</mosaic_0001>

<bundles_post_ra>
// kernel: tpu_custom_call.1
= control target key start
LH: loop header
LB: loop body
LE: loop exit
PB: predicated region body
PF: predicated region fallthrough
CT: control target
= control target key end

     0   :  { %9 = vsyncpa [#allocation3], 0  ;;  %s4556_s0 = inlined_call_operand.hbm [shape: f32[6,16,16], index: 0, kind: input, shape index: {}]   ;;  %s4557_s1 = inlined_call_operand.hbm [shape: f32[6,16,16], index: 1, kind: input, shape index: {}]   ;;  %s4558_s2 = inlined_call_operand.vmem [shape: f32[16,6], index: 2, kind: input, shape index: {}]   ;;  %s4559_s3 = inlined_call_operand.vmem [shape: f32[6,16], index: 3, kind: input, shape index: {}]   ;;  %s4560_s4 = inlined_call_operand.vmem [shape: f32[1,6,128], index: 4, kind: output, shape index: {}]  }
   0x1   :  { %10 = vsyncpa [#allocation5], 0  ;;  %s4018_s15 = smov [#allocation2]   ;;  %s3970_s19 = scalar_lea.hbm %s4556_s0, 1536 }
   0x2   :  { %s16_s16 = sshll.u32 %s4018_s15, 4  ;;  %p3971_p0 = scmp.ne.s32.totalorder %s4556_s0, %s3970_s19  ;;  %s17_s16 = int_to_ptr.vmem [resolvable:$true] %s16_s16 }
   0x3   :  { %p3974_p1 = scmp.lt.u32.totalorder %s3970_s19, %s4556_s0 }
   0x5   :  { %p3976_p2 = pnand %p3974_p1, %p3971_p0 }
   0x7   :  { %3979 = shalt.err (!%p3976_p2)
}
   0x8   :  { %s3980_s24 = scalar_lea.vmem %s17_s16, 1536  ;;  %p3985_p4 = scmp.lt.s32.totalorder %s17_s16, %s17_s16 }
   0x9   :  { %p3981_p3 = scmp.ne.s32.totalorder %s17_s16, %s3980_s24  ;;  %p3986_p5 = scmp.lt.s32.totalorder %s3980_s24, %s3980_s24 }
   0xb   :  { %p3987_p6 = por %p3986_p5, %p3985_p4 }
   0xd   :  { %p3988_p7 = pnand %p3987_p6, %p3981_p3 }
   0xf   :  { %3991 = shalt.err (!%p3988_p7)
}
  0x10   :  { %s4019_s25 = smov 128   ;;  %s4020_s26 = smov 8  }
  0x11   :  { %22 = dma.hbm_to_vmem [thread:$0]  %s4556_s0, 1536, %s17_s16, [#allocation3], %s4019_s25, %s4019_s25, %s4020_s26  }
  0x12   :  { %s4021_s29 = smov [#allocation4]   ;;  %s3992_s7 = scalar_lea.hbm %s4557_s1, 1536 }
  0x13   :  { %s28_s30 = sshll.u32 %s4021_s29, 4  ;;  %p3993_p8 = scmp.ne.s32.totalorder %s4557_s1, %s3992_s7  ;;  %s29_s30 = int_to_ptr.vmem [resolvable:$true] %s28_s30 }
  0x14   :  { %p3996_p9 = scmp.lt.u32.totalorder %s3992_s7, %s4557_s1 }
  0x16   :  { %p3998_p10 = pnand %p3996_p9, %p3993_p8 }
  0x18   :  { %4001 = shalt.err (!%p3998_p10)
}
  0x19   :  { %s4002_s12 = scalar_lea.vmem %s29_s30, 1536  ;;  %p4007_p12 = scmp.lt.s32.totalorder %s29_s30, %s29_s30 }
  0x1a   :  { %p4003_p11 = scmp.ne.s32.totalorder %s29_s30, %s4002_s12  ;;  %p4008_p13 = scmp.lt.s32.totalorder %s4002_s12, %s4002_s12 }
  0x1c   :  { %p4009_p0 = por %p4008_p13, %p4007_p12 }
  0x1e   :  { %p4010_p1 = pnand %p4009_p0, %p4003_p11 }
  0x20   :  { %4013 = shalt.err (!%p4010_p1)
}
  0x21   :  { %34 = dma.hbm_to_vmem [thread:$0]  %s4557_s1, 1536, %s29_s30, [#allocation5], %s4019_s25, %s4019_s25, %s4020_s26  }
  0x22   :  { %4014 = dma.done.wait [#allocation3], 1536  }
  0x23   :  { %4015 = vsyncadd [#allocation3], 4294965760 }
  0x24   :  { %4016 = dma.done.wait [#allocation5], 1536  }
  0x25   :  { %4017 = vsyncadd [#allocation5], 4294965760  ;;  %vm72_vm0 = vcmask 130048   ;;  %v69_v0 = vld [vmem:[%s4558_s2] sm:$0xff]  ;;  %v70_v1 = vld [vmem:[%s4558_s2 + $0x8] sm:$0xff]  ;;  %v4022_v62 = vmov 0.0|0.0  }
  0x26   :  { %v4080_v2 = vld [vmem:[#allocation2] sm:$0xff]  ;;  %v4082_v3 = vpack.c.bf16 %v70_v1, %v69_v0  ;;  %v4086_v4 = vld [vmem:[#allocation2 + $0x8] sm:$0xff]  ;;  %v47_v7 = vld [vmem:[#allocation2 + $0x10] sm:$0xff]  ;;  %3833 = vmatprep.subr.bf16.mxu1 %v4022_v62  ;;  %vm4023_vm1 = vmmov 0   ;;  %v4024_v0 = vmov 0.0   ;;  %vm3167_vm2 = vcmask 46080  }
  0x27   :  { %3513 = vmatprep.mubr.msk.f32.mxu0 %vm72_vm0, %v4080_v2  ;;  %v4088_v5 = vld [vmem:[#allocation4 + $0x8] sm:$0xff]  ;;  %v4096_v8 = vld [vmem:[#allocation2 + $0x18] sm:$0xff]  ;;  %v4098_v9 = vld [vmem:[#allocation2 + $0x20] sm:$0xff]  ;;  %v1238_v39 = vmul.f32 %v4080_v2, %v4080_v2  ;;  %v1239_v40 = vmul.f32 %v4086_v4, %v4086_v4  ;;  %v1240_v41 = vmul.f32 %v47_v7, %v47_v7  ;;  %3535 = vmatprep.mubr.msk.f32.mxu1 %vm4023_vm1, %v4024_v0  ;;  %vm3186_vm3 = vcmask 1045504  }
  0x28   :  { %v4092_v6 = vmul.f32 %v4088_v5, %v4086_v4  ;;  %3830 = vmatprep.subr.bf16.mxu0 %v4082_v3  ;;  %v4101_v10 = vld [vmem:[#allocation2 + $0x28] sm:$0xff]  ;;  %v4103_v11 = vld [vmem:[#allocation4] sm:$0xff]  ;;  %v4105_v12 = vld [vmem:[#allocation4 + $0x10] sm:$0xff]  ;;  %v1241_v42 = vmul.f32 %v4096_v8, %v4096_v8  ;;  %v1242_v43 = vmul.f32 %v4098_v9, %v4098_v9  ;;  %v1832_v52 = vmul.f32 %v4088_v5, %v4088_v5 }
  0x29   :  { %3832 = vmatpush3.bf16.msra.mxu0 %v4082_v3  ;;  %v4107_v13 = vld [vmem:[#allocation2 + $0x30] sm:$0xff]  ;;  %v4111_v14 = vmul.f32 %v4103_v11, %v4080_v2  ;;  %v4114_v15 = vmul.f32 %v4105_v12, %v47_v7  ;;  %v4116_v16 = vld [vmem:[#allocation4 + $0x18] sm:$0xff]  ;;  %v4118_v17 = vld [vmem:[#allocation4 + $0x20] sm:$0xff]  ;;  %v1243_v44 = vmul.f32 %v4101_v10, %v4101_v10  ;;  %v1831_v51 = vmul.f32 %v4103_v11, %v4103_v11 }
  0x2a   :  { %3852 = vmatprep.subr.bf16.mxu0 %v4082_v3  ;;  %v52_v18 = vld [vmem:[#allocation2 + $0x38] sm:$0xff]  ;;  %v53_v19 = vld [vmem:[#allocation2 + $0x40] sm:$0xff]  ;;  %v4124_v20 = vmul.f32 %v4116_v16, %v4096_v8  ;;  %v4128_v21 = vmul.f32 %v4118_v17, %v4098_v9  ;;  %v4130_v22 = vld [vmem:[#allocation4 + $0x28] sm:$0xff]  ;;  %v1244_v45 = vmul.f32 %v4107_v13, %v4107_v13  ;;  %v1833_v53 = vmul.f32 %v4105_v12, %v4105_v12 }
  0x2b   :  { %v54_v23 = vld [vmem:[#allocation2 + $0x48] sm:$0xff]  ;;  %v4136_v24 = vmul.f32 %v4130_v22, %v4101_v10  ;;  %v4138_v25 = vld [vmem:[#allocation4 + $0x30] sm:$0xff]  ;;  %v4140_v26 = vld [vmem:[#allocation4 + $0x38] sm:$0xff]  ;;  %v1245_v46 = vmul.f32 %v52_v18, %v52_v18  ;;  %v1246_v47 = vmul.f32 %v53_v19, %v53_v19  ;;  %v1834_v54 = vmul.f32 %v4116_v16, %v4116_v16 }
  0x2c   :  { %3514 = vmatmul.mubr.msk.f32.vlgmr.msra.gmra.mrb[0].mxu0 %vm72_vm0, %v4086_v4  ;;  %v55_v27 = vld [vmem:[#allocation2 + $0x50] sm:$0xff]  ;;  %v4145_v28 = vmul.f32 %v4138_v25, %v4107_v13  ;;  %v4148_v29 = vmul.f32 %v4140_v26, %v52_v18  ;;  %v4150_v30 = vld [vmem:[#allocation4 + $0x40] sm:$0xff]  ;;  %v4152_v31 = vld [vmem:[#allocation4 + $0x48] sm:$0xff]  ;;  %v1247_v48 = vmul.f32 %v54_v23, %v54_v23  ;;  %v1835_v55 = vmul.f32 %v4118_v17, %v4118_v17 }
  0x2d   :  { %3854 = vmatpush3.bf16.msra.mxu0 %v4082_v3  ;;  %3516 = vmatprep.mubr.msk.f32.mxu0 %vm72_vm0, %v47_v7  ;;  %v56_v32 = vld [vmem:[#allocation2 + $0x58] sm:$0xff]  ;;  %v4155_v33 = vmul.f32 %v4150_v30, %v53_v19  ;;  %v4158_v34 = vmul.f32 %v4152_v31, %v54_v23  ;;  %v4160_v35 = vld [vmem:[#allocation4 + $0x50] sm:$0xff]  ;;  %v1248_v49 = vmul.f32 %v55_v27, %v55_v27  ;;  %vm3241_vm4 = vcmask 1041409  }
  0x2e   :  { %3874 = vmatprep.subr.bf16.mxu0 %v4082_v3  ;;  %v4162_v36 = vld [vmem:[#allocation4 + $0x58] sm:$0xff]  ;;  %v4167_v37 = vmul.f32 %v4160_v35, %v55_v27  ;;  %v1249_v50 = vmul.f32 %v56_v32, %v56_v32  ;;  %v1836_v56 = vmul.f32 %v4130_v22, %v4130_v22  ;;  %v1837_v57 = vmul.f32 %v4138_v25, %v4138_v25 }
  0x2f   :  { %v4170_v38 = vmul.f32 %v4162_v36, %v56_v32  ;;  %v1838_v58 = vmul.f32 %v4140_v26, %v4140_v26  ;;  %v1839_v59 = vmul.f32 %v4150_v30, %v4150_v30  ;;  %v1840_v60 = vmul.f32 %v4152_v31, %v4152_v31 }
  0x30   :  { %3517 = vmatmul.mubr.msk.f32.gmra.mrb[2].mxu0 %vm72_vm0, %v4096_v8  ;;  %v1841_v61 = vmul.f32 %v4160_v35, %v4160_v35  ;;  %v1842_v63 = vmul.f32 %v4162_v36, %v4162_v36  ;;  %vm3243_vm5 = vcmask 1042434   ;;  %vm3245_vm6 = vcmask 1043459  }
  0x31   :  { %3519 = vmatprep.mubr.msk.f32.mxu0 %vm72_vm0, %v4098_v9  ;;  %vm3247_vm7 = vcmask 1044484   ;;  %vm3249_vm8 = vcmask 1045509  }
  0x34   :  { %3520 = vmatmul.mubr.msk.f32.gmra.mrb[4].mxu0 %vm72_vm0, %v4101_v10 }
  0x35   :  { %3522 = vmatprep.mubr.msk.f32.mxu0 %vm72_vm0, %v4107_v13 }
  0x38   :  { %3523 = vmatmul.mubr.msk.f32.gmra.mrb[6].mxu0 %vm72_vm0, %v52_v18 }
  0x39   :  { %3525 = vmatprep.mubr.msk.f32.mxu0 %vm72_vm0, %v53_v19 }
  0x3c   :  { %3526 = vmatmul.mubr.msk.f32.gmra.mrb[8].mxu0 %vm72_vm0, %v54_v23 }
  0x3d   :  { %3528 = vmatprep.mubr.msk.f32.mxu0 %vm72_vm0, %v55_v27 }
  0x40   :  { %3529 = vmatmul.mubr.msk.f32.gmra.mrb[10].mxu0 %vm72_vm0, %v56_v32 }
  0x41   :  { %3577 = vmatprep.mubr.msk.f32.mxu0 %vm72_vm0, %v4103_v11 }
  0x44   :  { %3578 = vmatmul.mubr.msk.f32.vlgmr.msra.gmra.mrb[12].mxu0 %vm72_vm0, %v4088_v5  ;;  %v4302_v5 = vld [vmem:[%s4559_s3] sm:$0x3f] }
  0x45   :  { %3876 = vmatpush3.bf16.msra.mxu0 %v4082_v3  ;;  %3580 = vmatprep.mubr.msk.f32.mxu0 %vm72_vm0, %v4105_v12 }
  0x46   :  { %3896 = vmatprep.subr.bf16.mxu0 %v4082_v3 }
  0x48   :  { %3581 = vmatmul.mubr.msk.f32.gmra.mrb[14].mxu0 %vm72_vm0, %v4116_v16 }
  0x49   :  { %3583 = vmatprep.mubr.msk.f32.mxu0 %vm72_vm0, %v4118_v17 }
  0x4c   :  { %3584 = vmatmul.mubr.msk.f32.gmra.mrb[16].mxu0 %vm72_vm0, %v4130_v22 }
  0x4d   :  { %3586 = vmatprep.mubr.msk.f32.mxu0 %vm72_vm0, %v4138_v25 }
  0x50   :  { %3587 = vmatmul.mubr.msk.f32.gmra.mrb[18].mxu0 %vm72_vm0, %v4140_v26 }
  0x51   :  { %3589 = vmatprep.mubr.msk.f32.mxu0 %vm72_vm0, %v4150_v30 }
  0x54   :  { %3590 = vmatmul.mubr.msk.f32.gmra.mrb[20].mxu0 %vm72_vm0, %v4152_v31 }
  0x55   :  { %3592 = vmatprep.mubr.msk.f32.mxu0 %vm72_vm0, %v4160_v35 }
  0x58   :  { %3593 = vmatmul.mubr.msk.f32.gmra.mrb[22].mxu0 %vm72_vm0, %v4162_v36 }
  0x59   :  { %3641 = vmatprep.mubr.msk.f32.mxu0 %vm72_vm0, %v1238_v39 }
  0x5c   :  { %3642 = vmatmul.mubr.msk.f32.vlgmr.msra.gmra.mrb[24].mxu0 %vm72_vm0, %v1239_v40 }
  0x5d   :  { %3898 = vmatpush3.bf16.msra.mxu0 %v4082_v3  ;;  %3644 = vmatprep.mubr.msk.f32.mxu0 %vm72_vm0, %v1240_v41 }
  0x5e   :  { %3918 = vmatprep.subr.bf16.mxu0 %v4082_v3 }
  0x60   :  { %3645 = vmatmul.mubr.msk.f32.gmra.mrb[26].mxu0 %vm72_vm0, %v1241_v42 }
  0x61   :  { %3647 = vmatprep.mubr.msk.f32.mxu0 %vm72_vm0, %v1242_v43 }
  0x64   :  { %3648 = vmatmul.mubr.msk.f32.gmra.mrb[28].mxu0 %vm72_vm0, %v1243_v44 }
  0x65   :  { %3650 = vmatprep.mubr.msk.f32.mxu0 %vm72_vm0, %v1244_v45 }
  0x68   :  { %3651 = vmatmul.mubr.msk.f32.gmra.mrb[30].mxu0 %vm72_vm0, %v1245_v46 }
  0x69   :  { %3653 = vmatprep.mubr.msk.f32.mxu0 %vm72_vm0, %v1246_v47 }
  0x6c   :  { %3654 = vmatmul.mubr.msk.f32.gmra.mrb[32].mxu0 %vm72_vm0, %v1247_v48 }
  0x6d   :  { %3656 = vmatprep.mubr.msk.f32.mxu0 %vm72_vm0, %v1248_v49 }
  0x70   :  { %3657 = vmatmul.mubr.msk.f32.gmra.mrb[34].mxu0 %vm72_vm0, %v1249_v50 }
  0x71   :  { %3705 = vmatprep.mubr.msk.f32.mxu0 %vm72_vm0, %v1831_v51 }
  0x74   :  { %3706 = vmatmul.mubr.msk.f32.vlgmr.msra.gmra.mrb[36].mxu0 %vm72_vm0, %v1832_v52 }
  0x75   :  { %3920 = vmatpush3.bf16.msra.mxu0 %v4082_v3  ;;  %3708 = vmatprep.mubr.msk.f32.mxu0 %vm72_vm0, %v1833_v53 }
  0x78   :  { %3709 = vmatmul.mubr.msk.f32.gmra.mrb[38].mxu0 %vm72_vm0, %v1834_v54 }
  0x79   :  { %3711 = vmatprep.mubr.msk.f32.mxu0 %vm72_vm0, %v1835_v55 }
  0x7c   :  { %3712 = vmatmul.mubr.msk.f32.gmra.mrb[40].mxu0 %vm72_vm0, %v1836_v56 }
  0x7d   :  { %3714 = vmatprep.mubr.msk.f32.mxu0 %vm72_vm0, %v1837_v57 }
  0x80   :  { %3715 = vmatmul.mubr.msk.f32.gmra.mrb[42].mxu0 %vm72_vm0, %v1838_v58 }
  0x81   :  { %3717 = vmatprep.mubr.msk.f32.mxu0 %vm72_vm0, %v1839_v59 }
  0x84   :  { %3718 = vmatmul.mubr.msk.f32.gmra.mrb[44].mxu0 %vm72_vm0, %v1840_v60 }
  0x85   :  { %3720 = vmatprep.mubr.msk.f32.mxu0 %vm72_vm0, %v1841_v61 }
  0x88   :  { %3721 = vmatmul.mubr.msk.f32.gmra.mrb[46].mxu0 %vm72_vm0, %v1842_v63 }
  0x89   :  { %3769 = vmatprep.mubr.msk.f32.mxu0 %vm72_vm0, %v4111_v14 }
  0x8c   :  { %3770 = vmatmul.mubr.msk.f32.vlgmr.msra.gmra.mrb[48].mxu0 %vm72_vm0, %v4092_v6 }
  0x8d   :  { %3772 = vmatprep.mubr.msk.f32.mxu0 %vm72_vm0, %v4114_v15 }
  0x90   :  { %3773 = vmatmul.mubr.msk.f32.gmra.mrb[50].mxu0 %vm72_vm0, %v4124_v20 }
  0x91   :  { %3775 = vmatprep.mubr.msk.f32.mxu0 %vm72_vm0, %v4128_v21 }
  0x94   :  { %3776 = vmatmul.mubr.msk.f32.gmra.mrb[52].mxu0 %vm72_vm0, %v4136_v24 }
  0x95   :  { %3778 = vmatprep.mubr.msk.f32.mxu0 %vm72_vm0, %v4145_v28 }
  0x98   :  { %3779 = vmatmul.mubr.msk.f32.gmra.mrb[54].mxu0 %vm72_vm0, %v4148_v29 }
  0x99   :  { %3781 = vmatprep.mubr.msk.f32.mxu0 %vm72_vm0, %v4155_v33 }
  0x9c   :  { %3782 = vmatmul.mubr.msk.f32.gmra.mrb[56].mxu0 %vm72_vm0, %v4158_v34 }
  0x9d   :  { %3784 = vmatprep.mubr.msk.f32.mxu0 %vm72_vm0, %v4167_v37 }
  0xa0   :  { %3785 = vmatmul.mubr.msk.f32.gmra.mrb[58].mxu0 %vm72_vm0, %v4170_v38 }
  0xff   :  { %v3515_v1 = vpop.f32.mrb[0].mxu0 }
 0x100   :  { %v175_v2 = vpop.f32.mrb[1].mxu0 }
 0x101   :  { %v3834_v3 = vpack.c.bf16 %v3515_v1, %v175_v2 }
 0x103   :  { %v3518_v4 = vpop.f32.mrb[2].mxu0  ;;  %3835 = vmatpush3.bf16.msra.mxu1 %v3834_v3 }
 0x104   :  { %v185_v6 = vpop.f32.mrb[3].mxu0  ;;  %3836 = vmatprep.subr.bf16.mxu1 %v4022_v62 }
 0x105   :  { %v3837_v7 = vpack.c.bf16 %v3518_v4, %v185_v6 }
 0x106   :  { %3536 = vmatmul.mubr.msk.f32.vlgmr.msra.gmra.mrb[0].mxu1 %vm72_vm0, %v4302_v5 }
 0x107   :  { %v3521_v8 = vpop.f32.mrb[4].mxu0  ;;  %3838 = vmatpush3.bf16.msra.mxu1 %v3837_v7  ;;  %3542 = vmatprep.mubr.msk.f32.mxu1 %vm4023_vm1, %v4024_v0 }
 0x108   :  { %v195_v9 = vpop.f32.mrb[5].mxu0  ;;  %3839 = vmatprep.subr.bf16.mxu1 %v4022_v62 }
 0x109   :  { %v3840_v10 = vpack.c.bf16 %v3521_v8, %v195_v9 }
 0x10a   :  { %3543 = vmatmul.mubr.msk.f32.vlgmr.msra.gmra.mrb[2].mxu1 %vm72_vm0, %v4302_v5 }
 0x10b   :  { %v3524_v11 = vpop.f32.mrb[6].mxu0  ;;  %3841 = vmatpush3.bf16.msra.mxu1 %v3840_v10  ;;  %3549 = vmatprep.mubr.msk.f32.mxu1 %vm4023_vm1, %v4024_v0 }
 0x10c   :  { %v205_v12 = vpop.f32.mrb[7].mxu0  ;;  %3842 = vmatprep.subr.bf16.mxu1 %v4022_v62 }
 0x10d   :  { %v3843_v13 = vpack.c.bf16 %v3524_v11, %v205_v12 }
 0x10e   :  { %3550 = vmatmul.mubr.msk.f32.vlgmr.msra.gmra.mrb[4].mxu1 %vm72_vm0, %v4302_v5 }
 0x10f   :  { %v3527_v14 = vpop.f32.mrb[8].mxu0  ;;  %3844 = vmatpush3.bf16.msra.mxu1 %v3843_v13  ;;  %3556 = vmatprep.mubr.msk.f32.mxu1 %vm4023_vm1, %v4024_v0 }
 0x110   :  { %v215_v15 = vpop.f32.mrb[9].mxu0  ;;  %3845 = vmatprep.subr.bf16.mxu1 %v4022_v62 }
 0x111   :  { %v3846_v16 = vpack.c.bf16 %v3527_v14, %v215_v15 }
 0x112   :  { %3557 = vmatmul.mubr.msk.f32.vlgmr.msra.gmra.mrb[6].mxu1 %vm72_vm0, %v4302_v5 }
 0x113   :  { %v3530_v17 = vpop.f32.mrb[10].mxu0  ;;  %3847 = vmatpush3.bf16.msra.mxu1 %v3846_v16  ;;  %3563 = vmatprep.mubr.msk.f32.mxu1 %vm4023_vm1, %v4024_v0 }
 0x114   :  { %v225_v18 = vpop.f32.mrb[11].mxu0  ;;  %3848 = vmatprep.subr.bf16.mxu1 %v4022_v62 }
 0x115   :  { %v3849_v19 = vpack.c.bf16 %v3530_v17, %v225_v18 }
 0x116   :  { %3564 = vmatmul.mubr.msk.f32.vlgmr.msra.gmra.mrb[8].mxu1 %vm72_vm0, %v4302_v5 }
 0x117   :  { %3850 = vmatpush3.bf16.msra.mxu1 %v3849_v19  ;;  %v3579_v20 = vpop.f32.mrb[12].mxu0  ;;  %3570 = vmatprep.mubr.msk.f32.mxu1 %vm4023_vm1, %v4024_v0 }
 0x118   :  { %v759_v21 = vpop.f32.mrb[13].mxu0  ;;  %3855 = vmatprep.subr.bf16.mxu1 %v4022_v62 }
 0x119   :  { %v3856_v22 = vpack.c.bf16 %v3579_v20, %v759_v21 }
 0x11a   :  { %3571 = vmatmul.mubr.msk.f32.vlgmr.msra.gmra.mrb[10].mxu1 %vm72_vm0, %v4302_v5 }
 0x11b   :  { %v3582_v23 = vpop.f32.mrb[14].mxu0  ;;  %3857 = vmatpush3.bf16.msra.mxu1 %v3856_v22  ;;  %3599 = vmatprep.mubr.msk.f32.mxu1 %vm4023_vm1, %v4024_v0 }
 0x11c   :  { %v769_v24 = vpop.f32.mrb[15].mxu0  ;;  %3858 = vmatprep.subr.bf16.mxu1 %v4022_v62 }
 0x11d   :  { %v3859_v25 = vpack.c.bf16 %v3582_v23, %v769_v24 }
 0x11e   :  { %3600 = vmatmul.mubr.msk.f32.vlgmr.msra.gmra.mrb[12].mxu1 %vm72_vm0, %v4302_v5 }
 0x11f   :  { %v3585_v26 = vpop.f32.mrb[16].mxu0  ;;  %3860 = vmatpush3.bf16.msra.mxu1 %v3859_v25  ;;  %3606 = vmatprep.mubr.msk.f32.mxu1 %vm4023_vm1, %v4024_v0 }
 0x120   :  { %v779_v27 = vpop.f32.mrb[17].mxu0  ;;  %3861 = vmatprep.subr.bf16.mxu1 %v4022_v62 }
 0x121   :  { %v3862_v28 = vpack.c.bf16 %v3585_v26, %v779_v27 }
 0x122   :  { %3607 = vmatmul.mubr.msk.f32.vlgmr.msra.gmra.mrb[14].mxu1 %vm72_vm0, %v4302_v5 }
 0x123   :  { %v3588_v29 = vpop.f32.mrb[18].mxu0  ;;  %3863 = vmatpush3.bf16.msra.mxu1 %v3862_v28  ;;  %3613 = vmatprep.mubr.msk.f32.mxu1 %vm4023_vm1, %v4024_v0 }
 0x124   :  { %v789_v30 = vpop.f32.mrb[19].mxu0  ;;  %3864 = vmatprep.subr.bf16.mxu1 %v4022_v62 }
 0x125   :  { %v3865_v31 = vpack.c.bf16 %v3588_v29, %v789_v30 }
 0x126   :  { %3614 = vmatmul.mubr.msk.f32.vlgmr.msra.gmra.mrb[16].mxu1 %vm72_vm0, %v4302_v5 }
 0x127   :  { %v3591_v32 = vpop.f32.mrb[20].mxu0  ;;  %3866 = vmatpush3.bf16.msra.mxu1 %v3865_v31  ;;  %3620 = vmatprep.mubr.msk.f32.mxu1 %vm4023_vm1, %v4024_v0 }
 0x128   :  { %v799_v33 = vpop.f32.mrb[21].mxu0  ;;  %3867 = vmatprep.subr.bf16.mxu1 %v4022_v62 }
 0x129   :  { %v3868_v34 = vpack.c.bf16 %v3591_v32, %v799_v33 }
 0x12a   :  { %3621 = vmatmul.mubr.msk.f32.vlgmr.msra.gmra.mrb[18].mxu1 %vm72_vm0, %v4302_v5 }
 0x12b   :  { %v3594_v35 = vpop.f32.mrb[22].mxu0  ;;  %3869 = vmatpush3.bf16.msra.mxu1 %v3868_v34  ;;  %3627 = vmatprep.mubr.msk.f32.mxu1 %vm4023_vm1, %v4024_v0 }
 0x12c   :  { %v809_v36 = vpop.f32.mrb[23].mxu0  ;;  %3870 = vmatprep.subr.bf16.mxu1 %v4022_v62 }
 0x12d   :  { %v3871_v37 = vpack.c.bf16 %v3594_v35, %v809_v36 }
 0x12e   :  { %3628 = vmatmul.mubr.msk.f32.vlgmr.msra.gmra.mrb[20].mxu1 %vm72_vm0, %v4302_v5 }
 0x12f   :  { %3872 = vmatpush3.bf16.msra.mxu1 %v3871_v37  ;;  %v3643_v38 = vpop.f32.mrb[24].mxu0  ;;  %3634 = vmatprep.mubr.msk.f32.mxu1 %vm4023_vm1, %v4024_v0 }
 0x130   :  { %v1352_v39 = vpop.f32.mrb[25].mxu0  ;;  %3877 = vmatprep.subr.bf16.mxu1 %v4022_v62 }
 0x131   :  { %v3878_v40 = vpack.c.bf16 %v3643_v38, %v1352_v39 }
 0x132   :  { %3635 = vmatmul.mubr.msk.f32.vlgmr.msra.gmra.mrb[22].mxu1 %vm72_vm0, %v4302_v5 }
 0x133   :  { %v3646_v41 = vpop.f32.mrb[26].mxu0  ;;  %3879 = vmatpush3.bf16.msra.mxu1 %v3878_v40  ;;  %3663 = vmatprep.mubr.msk.f32.mxu1 %vm4023_vm1, %v4024_v0 }
 0x134   :  { %v1362_v42 = vpop.f32.mrb[27].mxu0  ;;  %3880 = vmatprep.subr.bf16.mxu1 %v4022_v62 }
 0x135   :  { %v3881_v43 = vpack.c.bf16 %v3646_v41, %v1362_v42 }
 0x136   :  { %3664 = vmatmul.mubr.msk.f32.vlgmr.msra.gmra.mrb[24].mxu1 %vm72_vm0, %v4302_v5 }
 0x137   :  { %v3649_v44 = vpop.f32.mrb[28].mxu0  ;;  %3882 = vmatpush3.bf16.msra.mxu1 %v3881_v43  ;;  %3670 = vmatprep.mubr.msk.f32.mxu1 %vm4023_vm1, %v4024_v0 }
 0x138   :  { %v1372_v45 = vpop.f32.mrb[29].mxu0  ;;  %3883 = vmatprep.subr.bf16.mxu1 %v4022_v62 }
 0x139   :  { %v3884_v46 = vpack.c.bf16 %v3649_v44, %v1372_v45 }
 0x13a   :  { %3671 = vmatmul.mubr.msk.f32.vlgmr.msra.gmra.mrb[26].mxu1 %vm72_vm0, %v4302_v5 }
 0x13b   :  { %v3652_v47 = vpop.f32.mrb[30].mxu0  ;;  %3885 = vmatpush3.bf16.msra.mxu1 %v3884_v46  ;;  %3677 = vmatprep.mubr.msk.f32.mxu1 %vm4023_vm1, %v4024_v0 }
 0x13c   :  { %v1382_v48 = vpop.f32.mrb[31].mxu0  ;;  %3886 = vmatprep.subr.bf16.mxu1 %v4022_v62 }
 0x13d   :  { %v3887_v49 = vpack.c.bf16 %v3652_v47, %v1382_v48 }
 0x13e   :  { %3678 = vmatmul.mubr.msk.f32.vlgmr.msra.gmra.mrb[28].mxu1 %vm72_vm0, %v4302_v5 }
 0x13f   :  { %v3655_v50 = vpop.f32.mrb[32].mxu0  ;;  %3888 = vmatpush3.bf16.msra.mxu1 %v3887_v49  ;;  %3684 = vmatprep.mubr.msk.f32.mxu1 %vm4023_vm1, %v4024_v0 }
 0x140   :  { %v1392_v51 = vpop.f32.mrb[33].mxu0  ;;  %3889 = vmatprep.subr.bf16.mxu1 %v4022_v62 }
 0x141   :  { %v3890_v52 = vpack.c.bf16 %v3655_v50, %v1392_v51 }
 0x142   :  { %3685 = vmatmul.mubr.msk.f32.vlgmr.msra.gmra.mrb[30].mxu1 %vm72_vm0, %v4302_v5 }
 0x143   :  { %v3658_v53 = vpop.f32.mrb[34].mxu0  ;;  %3891 = vmatpush3.bf16.msra.mxu1 %v3890_v52  ;;  %3691 = vmatprep.mubr.msk.f32.mxu1 %vm4023_vm1, %v4024_v0 }
 0x144   :  { %v1402_v54 = vpop.f32.mrb[35].mxu0  ;;  %3892 = vmatprep.subr.bf16.mxu1 %v4022_v62 }
 0x145   :  { %v3893_v55 = vpack.c.bf16 %v3658_v53, %v1402_v54 }
 0x146   :  { %3692 = vmatmul.mubr.msk.f32.vlgmr.msra.gmra.mrb[32].mxu1 %vm72_vm0, %v4302_v5 }
 0x147   :  { %3894 = vmatpush3.bf16.msra.mxu1 %v3893_v55  ;;  %v3707_v56 = vpop.f32.mrb[36].mxu0  ;;  %3698 = vmatprep.mubr.msk.f32.mxu1 %vm4023_vm1, %v4024_v0 }
 0x148   :  { %v1945_v57 = vpop.f32.mrb[37].mxu0  ;;  %3899 = vmatprep.subr.bf16.mxu1 %v4022_v62 }
 0x149   :  { %v3900_v58 = vpack.c.bf16 %v3707_v56, %v1945_v57 }
 0x14a   :  { %3699 = vmatmul.mubr.msk.f32.vlgmr.msra.gmra.mrb[34].mxu1 %vm72_vm0, %v4302_v5 }
 0x14b   :  { %v3710_v59 = vpop.f32.mrb[38].mxu0  ;;  %3901 = vmatpush3.bf16.msra.mxu1 %v3900_v58  ;;  %3727 = vmatprep.mubr.msk.f32.mxu1 %vm4023_vm1, %v4024_v0 }
 0x14c   :  { %v1955_v60 = vpop.f32.mrb[39].mxu0  ;;  %3902 = vmatprep.subr.bf16.mxu1 %v4022_v62 }
 0x14d   :  { %v3903_v61 = vpack.c.bf16 %v3710_v59, %v1955_v60 }
 0x14e   :  { %3728 = vmatmul.mubr.msk.f32.vlgmr.msra.gmra.mrb[36].mxu1 %vm72_vm0, %v4302_v5 }
 0x14f   :  { %v3713_v63 = vpop.f32.mrb[40].mxu0  ;;  %3904 = vmatpush3.bf16.msra.mxu1 %v3903_v61  ;;  %3734 = vmatprep.mubr.msk.f32.mxu1 %vm4023_vm1, %v4024_v0 }
 0x150   :  { %v1965_v1 = vpop.f32.mrb[41].mxu0  ;;  %3905 = vmatprep.subr.bf16.mxu1 %v4022_v62 }
 0x151   :  { %v3906_v2 = vpack.c.bf16 %v3713_v63, %v1965_v1 }
 0x152   :  { %3735 = vmatmul.mubr.msk.f32.vlgmr.msra.gmra.mrb[38].mxu1 %vm72_vm0, %v4302_v5 }
 0x153   :  { %v3716_v3 = vpop.f32.mrb[42].mxu0  ;;  %3907 = vmatpush3.bf16.msra.mxu1 %v3906_v2  ;;  %3741 = vmatprep.mubr.msk.f32.mxu1 %vm4023_vm1, %v4024_v0 }
 0x154   :  { %v1975_v4 = vpop.f32.mrb[43].mxu0  ;;  %3908 = vmatprep.subr.bf16.mxu1 %v4022_v62 }
 0x155   :  { %v3909_v6 = vpack.c.bf16 %v3716_v3, %v1975_v4 }
 0x156   :  { %3742 = vmatmul.mubr.msk.f32.vlgmr.msra.gmra.mrb[40].mxu1 %vm72_vm0, %v4302_v5 }
 0x157   :  { %v3719_v7 = vpop.f32.mrb[44].mxu0  ;;  %3910 = vmatpush3.bf16.msra.mxu1 %v3909_v6  ;;  %3748 = vmatprep.mubr.msk.f32.mxu1 %vm4023_vm1, %v4024_v0 }
 0x158   :  { %v1985_v8 = vpop.f32.mrb[45].mxu0  ;;  %3911 = vmatprep.subr.bf16.mxu1 %v4022_v62 }
 0x159   :  { %v3912_v9 = vpack.c.bf16 %v3719_v7, %v1985_v8 }
 0x15a   :  { %3749 = vmatmul.mubr.msk.f32.vlgmr.msra.gmra.mrb[42].mxu1 %vm72_vm0, %v4302_v5 }
 0x15b   :  { %v3722_v10 = vpop.f32.mrb[46].mxu0  ;;  %3913 = vmatpush3.bf16.msra.mxu1 %v3912_v9  ;;  %3755 = vmatprep.mubr.msk.f32.mxu1 %vm4023_vm1, %v4024_v0 }
 0x15c   :  { %v1995_v11 = vpop.f32.mrb[47].mxu0  ;;  %3914 = vmatprep.subr.bf16.mxu1 %v4022_v62 }
 0x15d   :  { %v3915_v12 = vpack.c.bf16 %v3722_v10, %v1995_v11 }
 0x15e   :  { %3756 = vmatmul.mubr.msk.f32.vlgmr.msra.gmra.mrb[44].mxu1 %vm72_vm0, %v4302_v5 }
 0x15f   :  { %3916 = vmatpush3.bf16.msra.mxu1 %v3915_v12  ;;  %v3771_v13 = vpop.f32.mrb[48].mxu0  ;;  %3762 = vmatprep.mubr.msk.f32.mxu1 %vm4023_vm1, %v4024_v0 }
 0x160   :  { %v2538_v14 = vpop.f32.mrb[49].mxu0  ;;  %3921 = vmatprep.subr.bf16.mxu1 %v4022_v62 }
 0x161   :  { %v3922_v15 = vpack.c.bf16 %v3771_v13, %v2538_v14 }
 0x162   :  { %3763 = vmatmul.mubr.msk.f32.vlgmr.msra.gmra.mrb[46].mxu1 %vm72_vm0, %v4302_v5 }
 0x163   :  { %v3774_v16 = vpop.f32.mrb[50].mxu0  ;;  %3923 = vmatpush3.bf16.msra.mxu1 %v3922_v15  ;;  %3791 = vmatprep.mubr.msk.f32.mxu1 %vm4023_vm1, %v4024_v0 }
 0x164   :  { %v2548_v17 = vpop.f32.mrb[51].mxu0  ;;  %3924 = vmatprep.subr.bf16.mxu1 %v4022_v62 }
 0x165   :  { %v3925_v18 = vpack.c.bf16 %v3774_v16, %v2548_v17 }
 0x166   :  { %3792 = vmatmul.mubr.msk.f32.vlgmr.msra.gmra.mrb[48].mxu1 %vm72_vm0, %v4302_v5 }
 0x167   :  { %v3777_v19 = vpop.f32.mrb[52].mxu0  ;;  %3926 = vmatpush3.bf16.msra.mxu1 %v3925_v18  ;;  %3798 = vmatprep.mubr.msk.f32.mxu1 %vm4023_vm1, %v4024_v0 }
 0x168   :  { %v2558_v20 = vpop.f32.mrb[53].mxu0  ;;  %3927 = vmatprep.subr.bf16.mxu1 %v4022_v62 }
 0x169   :  { %v3928_v21 = vpack.c.bf16 %v3777_v19, %v2558_v20 }
 0x16a   :  { %3799 = vmatmul.mubr.msk.f32.vlgmr.msra.gmra.mrb[50].mxu1 %vm72_vm0, %v4302_v5 }
 0x16b   :  { %v3780_v22 = vpop.f32.mrb[54].mxu0  ;;  %3929 = vmatpush3.bf16.msra.mxu1 %v3928_v21  ;;  %3805 = vmatprep.mubr.msk.f32.mxu1 %vm4023_vm1, %v4024_v0 }
 0x16c   :  { %v2568_v23 = vpop.f32.mrb[55].mxu0  ;;  %3930 = vmatprep.subr.bf16.mxu1 %v4022_v62 }
 0x16d   :  { %v3931_v24 = vpack.c.bf16 %v3780_v22, %v2568_v23 }
 0x16e   :  { %3806 = vmatmul.mubr.msk.f32.vlgmr.msra.gmra.mrb[52].mxu1 %vm72_vm0, %v4302_v5 }
 0x16f   :  { %v3783_v25 = vpop.f32.mrb[56].mxu0  ;;  %3932 = vmatpush3.bf16.msra.mxu1 %v3931_v24  ;;  %3812 = vmatprep.mubr.msk.f32.mxu1 %vm4023_vm1, %v4024_v0 }
 0x170   :  { %v2578_v26 = vpop.f32.mrb[57].mxu0  ;;  %3933 = vmatprep.subr.bf16.mxu1 %v4022_v62 }
 0x171   :  { %v3934_v27 = vpack.c.bf16 %v3783_v25, %v2578_v26 }
 0x172   :  { %3813 = vmatmul.mubr.msk.f32.vlgmr.msra.gmra.mrb[54].mxu1 %vm72_vm0, %v4302_v5 }
 0x173   :  { %v3786_v28 = vpop.f32.mrb[58].mxu0  ;;  %3935 = vmatpush3.bf16.msra.mxu1 %v3934_v27  ;;  %3819 = vmatprep.mubr.msk.f32.mxu1 %vm4023_vm1, %v4024_v0 }
 0x174   :  { %v2588_v29 = vpop.f32.mrb[59].mxu0  ;;  %3936 = vmatprep.subr.bf16.mxu1 %v4022_v62 }
 0x175   :  { %v3937_v30 = vpack.c.bf16 %v3786_v28, %v2588_v29 }
 0x176   :  { %3820 = vmatmul.mubr.msk.f32.vlgmr.msra.gmra.mrb[56].mxu1 %vm72_vm0, %v4302_v5 }
 0x177   :  { %3938 = vmatpush3.bf16.msra.mxu1 %v3937_v30  ;;  %3826 = vmatprep.mubr.msk.f32.mxu1 %vm4023_vm1, %v4024_v0 }
 0x17a   :  { %3827 = vmatmul.mubr.msk.f32.vlgmr.msra.gmra.mrb[58].mxu1 %vm72_vm0, %v4302_v5 }
 0x1d9   :  { %v303_v31 = vpop.f32.mrb[0].mxu1 }
 0x1da   :  { %v3537_v32 = vpop.f32.mrb[1].mxu1  ;;  %v4451_v43 = vmul.f32 %v303_v31, %v303_v31 }
 0x1dd   :  { %v373_v33 = vpop.f32.mrb[2].mxu1 }
 0x1de   :  { %v3544_v34 = vpop.f32.mrb[3].mxu1  ;;  %v4459_v47 = vmul.f32 %v373_v33, %v373_v33 }
 0x1e1   :  { %v443_v35 = vpop.f32.mrb[4].mxu1 }
 0x1e2   :  { %v3551_v36 = vpop.f32.mrb[5].mxu1  ;;  %v4467_v54 = vmul.f32 %v443_v35, %v443_v35 }
 0x1e5   :  { %v513_v37 = vpop.f32.mrb[6].mxu1 }
 0x1e6   :  { %v3558_v38 = vpop.f32.mrb[7].mxu1  ;;  %v4475_v61 = vmul.f32 %v513_v37, %v513_v37 }
 0x1e9   :  { %v583_v62 = vpop.f32.mrb[8].mxu1 }
 0x1ea   :  { %v3565_v39 = vpop.f32.mrb[9].mxu1  ;;  %v4483_v8 = vmul.f32 %v583_v62, %v583_v62 }
 0x1ed   :  { %v653_v40 = vpop.f32.mrb[10].mxu1 }
 0x1ee   :  { %v3572_v41 = vpop.f32.mrb[11].mxu1  ;;  %v4492_v19 = vmul.f32 %v653_v40, %v653_v40 }
 0x1f1   :  { %v884_v42 = vpop.f32.mrb[12].mxu1 }
 0x1f2   :  { %v4453_v44 = vmul.f32 %v884_v42, %v884_v42  ;;  %v4455_v0 = vmul.f32 %v884_v42, %v303_v31  ;;  %v3601_v5 = vpop.f32.mrb[13].mxu1 }
 0x1f4   :  { %v3119_v45 = vadd.f32 %v4453_v44, %v4451_v43  ;;  %v3107_v13 = vmul.f32 2.0, %v4455_v0 }
 0x1f5   :  { %v954_v46 = vpop.f32.mrb[14].mxu1 }
 0x1f6   :  { %v3125_v48 = vadd.f32 6.5025, %v3119_v45  ;;  %v4461_v49 = vmul.f32 %v954_v46, %v954_v46  ;;  %v4463_v50 = vmul.f32 %v954_v46, %v373_v33  ;;  %v3608_v51 = vpop.f32.mrb[15].mxu1  ;;  %v3113_v24 = vadd.f32 6.5025, %v3107_v13 }
 0x1f8   :  { %3946 = vrcp.f32 %v3125_v48  ;;  %v3120_v52 = vadd.f32 %v4461_v49, %v4459_v47  ;;  %v3108_v25 = vmul.f32 2.0, %v4463_v50 }
 0x1f9   :  { %v1024_v53 = vpop.f32.mrb[16].mxu1 }
 0x1fa   :  { %v3126_v55 = vadd.f32 6.5025, %v3120_v52  ;;  %v4469_v56 = vmul.f32 %v1024_v53, %v1024_v53  ;;  %v4471_v57 = vmul.f32 %v1024_v53, %v443_v35  ;;  %v3615_v58 = vpop.f32.mrb[17].mxu1  ;;  %v3114_v36 = vadd.f32 6.5025, %v3108_v25 }
 0x1fc   :  { %3948 = vrcp.f32 %v3126_v55  ;;  %v3121_v59 = vadd.f32 %v4469_v56, %v4467_v54 }
 0x1fd   :  { %v1094_v60 = vpop.f32.mrb[18].mxu1 }
 0x1fe   :  { %v3127_v63 = vadd.f32 6.5025, %v3121_v59  ;;  %v4477_v1 = vmul.f32 %v1094_v60, %v1094_v60  ;;  %v4479_v2 = vmul.f32 %v1094_v60, %v513_v37  ;;  %v3622_v3 = vpop.f32.mrb[19].mxu1  ;;  %v3109_v37 = vmul.f32 2.0, %v4471_v57 }
 0x200   :  { %3950 = vrcp.f32 %v3127_v63  ;;  %v3122_v4 = vadd.f32 %v4477_v1, %v4475_v61  ;;  %v3115_v46 = vadd.f32 6.5025, %v3109_v37 }
 0x201   :  { %v1164_v6 = vpop.f32.mrb[20].mxu1 }
 0x202   :  { %v3947_v7 = vpop.eup %3946  ;;  %v3128_v9 = vadd.f32 6.5025, %v3122_v4  ;;  %v4485_v10 = vmul.f32 %v1164_v6, %v1164_v6  ;;  %v4487_v11 = vmul.f32 %v1164_v6, %v583_v62  ;;  %v3629_v12 = vpop.f32.mrb[21].mxu1 }
 0x203   :  { %v3137_v14 = vmul.f32 %v3947_v7, %v3125_v48  ;;  %v3110_v48 = vmul.f32 2.0, %v4479_v2 }
 0x204   :  { %3952 = vrcp.f32 %v3128_v9  ;;  %v3123_v15 = vadd.f32 %v4485_v10, %v4483_v8  ;;  %v3111_v3 = vmul.f32 2.0, %v4487_v11 }
 0x205   :  { %v3143_v16 = vsub.f32 2.0, %v3137_v14  ;;  %v1234_v17 = vpop.f32.mrb[22].mxu1 }
 0x206   :  { %v3949_v18 = vpop.eup %3948  ;;  %v3129_v20 = vadd.f32 6.5025, %v3123_v15  ;;  %v4494_v21 = vmul.f32 %v1234_v17, %v1234_v17  ;;  %v4496_v22 = vmul.f32 %v1234_v17, %v653_v40  ;;  %v3636_v23 = vpop.f32.mrb[23].mxu1  ;;  %v3117_v15 = vadd.f32 6.5025, %v3111_v3 }
 0x207   :  { %v3138_v26 = vmul.f32 %v3949_v18, %v3126_v55  ;;  %v3149_v27 = vmul.f32 %v3947_v7, %v3143_v16 }
 0x208   :  { %3954 = vrcp.f32 %v3129_v20  ;;  %v3124_v28 = vadd.f32 %v4494_v21, %v4492_v19  ;;  %v3112_v16 = vmul.f32 2.0, %v4496_v22 }
 0x209   :  { %v3144_v29 = vsub.f32 2.0, %v3138_v26  ;;  %v1477_v30 = vpop.f32.mrb[24].mxu1  ;;  %v4501_v31 = vmul.f32 %v3149_v27, %v3113_v24 }
 0x20a   :  { %v3951_v32 = vpop.eup %3950  ;;  %v3130_v33 = vadd.f32 6.5025, %v3124_v28  ;;  %v3035_v34 = vsub.f32 %v1477_v30, %v4451_v43  ;;  %v3665_v35 = vpop.f32.mrb[25].mxu1  ;;  %v3118_v26 = vadd.f32 6.5025, %v3112_v16 }
 0x20b   :  { %v3139_v38 = vmul.f32 %v3951_v32, %v3127_v63  ;;  %v3150_v62 = vmul.f32 %v3949_v18, %v3144_v29  ;;  %v3116_v63 = vadd.f32 6.5025, %v3110_v48 }
 0x20c   :  { %3956 = vrcp.f32 %v3130_v33 }
 0x20d   :  { %v3145_v39 = vsub.f32 2.0, %v3139_v38  ;;  %v1547_v40 = vpop.f32.mrb[26].mxu1  ;;  %v4505_v41 = vmul.f32 %v3150_v62, %v3114_v36 }
 0x20e   :  { %v3953_v42 = vpop.eup %3952  ;;  %v3036_v5 = vsub.f32 %v1547_v40, %v4459_v47  ;;  %v3672_v45 = vpop.f32.mrb[27].mxu1 }
 0x20f   :  { %v3140_v51 = vmul.f32 %v3953_v42, %v3128_v9  ;;  %v3151_v43 = vmul.f32 %v3951_v32, %v3145_v39 }
 0x211   :  { %v3146_v52 = vsub.f32 2.0, %v3140_v51  ;;  %v1617_v53 = vpop.f32.mrb[28].mxu1  ;;  %v4509_v55 = vmul.f32 %v3151_v43, %v3115_v46 }
 0x212   :  { %v3955_v58 = vpop.eup %3954  ;;  %v3037_v59 = vsub.f32 %v1617_v53, %v4467_v54  ;;  %v3679_v60 = vpop.f32.mrb[29].mxu1 }
 0x213   :  { %v3141_v4 = vmul.f32 %v3955_v58, %v3129_v20  ;;  %v3152_v6 = vmul.f32 %v3953_v42, %v3146_v52 }
 0x215   :  { %v3147_v47 = vsub.f32 2.0, %v3141_v4  ;;  %v1687_v7 = vpop.f32.mrb[30].mxu1  ;;  %v4513_v12 = vmul.f32 %v3152_v6, %v3116_v63 }
 0x216   :  { %v3957_v13 = vpop.eup %3956  ;;  %v3038_v9 = vsub.f32 %v1687_v7, %v4475_v61  ;;  %v3686_v14 = vpop.f32.mrb[31].mxu1 }
 0x217   :  { %v3142_v17 = vmul.f32 %v3957_v13, %v3130_v33  ;;  %v3153_v18 = vmul.f32 %v3955_v58, %v3147_v47 }
 0x219   :  { %v3148_v54 = vsub.f32 2.0, %v3142_v17  ;;  %v1757_v23 = vpop.f32.mrb[32].mxu1  ;;  %v4517_v24 = vmul.f32 %v3153_v18, %v3117_v15 }
 0x21a   :  { %v3039_v20 = vsub.f32 %v1757_v23, %v4483_v8  ;;  %v3693_v25 = vpop.f32.mrb[33].mxu1 }
 0x21b   :  { %v3154_v27 = vmul.f32 %v3957_v13, %v3148_v54 }
 0x21d   :  { %v1827_v28 = vpop.f32.mrb[34].mxu1  ;;  %v4520_v29 = vmul.f32 %v3154_v27, %v3118_v26 }
 0x21e   :  { %v3040_v61 = vsub.f32 %v1827_v28, %v4492_v19  ;;  %v3700_v30 = vpop.f32.mrb[35].mxu1 }
 0x221   :  { %v2070_v32 = vpop.f32.mrb[36].mxu1 }
 0x222   :  { %v3041_v35 = vsub.f32 %v2070_v32, %v4453_v44  ;;  %v3729_v33 = vpop.f32.mrb[37].mxu1 }
 0x224   :  { %v3065_v36 = vadd.f32 %v3041_v35, %v3035_v34 }
 0x225   :  { %v2140_v37 = vpop.f32.mrb[38].mxu1 }
 0x226   :  { %v3071_v38 = vadd.f32 58.5225, %v3065_v36  ;;  %v3042_v62 = vsub.f32 %v2140_v37, %v4461_v49  ;;  %v3736_v39 = vpop.f32.mrb[39].mxu1 }
 0x228   :  { %v3066_v8 = vadd.f32 %v3042_v62, %v3036_v5  ;;  %3958 = vrcp.f32 %v3071_v38 }
 0x229   :  { %v2210_v40 = vpop.f32.mrb[40].mxu1 }
 0x22a   :  { %v3072_v42 = vadd.f32 58.5225, %v3066_v8  ;;  %v3043_v45 = vsub.f32 %v2210_v40, %v4469_v56  ;;  %v3743_v46 = vpop.f32.mrb[41].mxu1 }
 0x22c   :  { %3960 = vrcp.f32 %v3072_v42  ;;  %v3067_v19 = vadd.f32 %v3043_v45, %v3037_v59 }
 0x22d   :  { %v2280_v48 = vpop.f32.mrb[42].mxu1 }
 0x22e   :  { %v3073_v51 = vadd.f32 58.5225, %v3067_v19  ;;  %v3044_v44 = vsub.f32 %v2280_v48, %v4477_v1  ;;  %v3750_v43 = vpop.f32.mrb[43].mxu1 }
 0x230   :  { %v3068_v34 = vadd.f32 %v3044_v44, %v3038_v9  ;;  %3962 = vrcp.f32 %v3073_v51 }
 0x231   :  { %v2350_v52 = vpop.f32.mrb[44].mxu1 }
 0x232   :  { %v3074_v53 = vadd.f32 58.5225, %v3068_v34  ;;  %v3045_v49 = vsub.f32 %v2350_v52, %v4485_v10  ;;  %v3757_v5 = vpop.f32.mrb[45].mxu1  ;;  %v3959_v58 = vpop.eup %3958 }
 0x233   :  { %v3083_v3 = vmul.f32 %v3959_v58, %v3071_v38 }
 0x234   :  { %3964 = vrcp.f32 %v3074_v53  ;;  %v3069_v60 = vadd.f32 %v3045_v49, %v3039_v20 }
 0x235   :  { %v2420_v63 = vpop.f32.mrb[46].mxu1  ;;  %v3089_v13 = vsub.f32 2.0, %v3083_v3 }
 0x236   :  { %v3961_v56 = vpop.eup %3960  ;;  %v3075_v4 = vadd.f32 58.5225, %v3069_v60  ;;  %v3046_v59 = vsub.f32 %v2420_v63, %v4494_v21  ;;  %v3764_v6 = vpop.f32.mrb[47].mxu1 }
 0x237   :  { %v3084_v47 = vmul.f32 %v3961_v56, %v3072_v42  ;;  %v3095_v25 = vmul.f32 %v3959_v58, %v3089_v13 }
 0x238   :  { %3966 = vrcp.f32 %v3075_v4  ;;  %v3070_v1 = vadd.f32 %v3046_v59, %v3040_v61 }
 0x239   :  { %v2663_v7 = vpop.f32.mrb[48].mxu1  ;;  %v3090_v17 = vsub.f32 2.0, %v3084_v47 }
 0x23a   :  { %v3076_v9 = vadd.f32 58.5225, %v3070_v1  ;;  %v3047_v14 = vsub.f32 %v2663_v7, %v4455_v0  ;;  %v3793_v10 = vpop.f32.mrb[49].mxu1  ;;  %v3963_v15 = vpop.eup %3962 }
 0x23b   :  { %v3085_v23 = vmul.f32 %v3963_v15, %v3073_v51  ;;  %v3096_v30 = vmul.f32 %v3961_v56, %v3090_v17 }
 0x23c   :  { %v3053_v16 = vmul.f32 2.0, %v3047_v14  ;;  %3968 = vrcp.f32 %v3076_v9 }
 0x23d   :  { %v2733_v18 = vpop.f32.mrb[50].mxu1  ;;  %v3091_v35 = vsub.f32 2.0, %v3085_v23 }
 0x23e   :  { %v3965_v54 = vpop.eup %3964  ;;  %v3059_v20 = vadd.f32 58.5225, %v3053_v16  ;;  %v3048_v21 = vsub.f32 %v2733_v18, %v4463_v50  ;;  %v3800_v26 = vpop.f32.mrb[51].mxu1 }
 0x23f   :  { %v3086_v61 = vmul.f32 %v3965_v54, %v3074_v53  ;;  %v3097_v46 = vmul.f32 %v3963_v15, %v3091_v35 }
 0x240   :  { %v3101_v27 = vmul.f32 %v3095_v25, %v3059_v20  ;;  %v3054_v28 = vmul.f32 2.0, %v3048_v21 }
 0x241   :  { %v2803_v32 = vpop.f32.mrb[52].mxu1  ;;  %v3092_v50 = vsub.f32 2.0, %v3086_v61 }
 0x242   :  { %v3967_v0 = vpop.eup %3966  ;;  %v3060_v33 = vadd.f32 58.5225, %v3054_v28  ;;  %v3049_v36 = vsub.f32 %v2803_v32, %v4471_v57  ;;  %v3807_v37 = vpop.f32.mrb[53].mxu1  ;;  %v3161_v38 = vmul.f32 %v4501_v31, %v3101_v27 }
 0x243   :  { %v3087_v40 = vmul.f32 %v3967_v0, %v3075_v4  ;;  %v3098_v52 = vmul.f32 %v3965_v54, %v3092_v50 }
 0x244   :  { %v3102_v62 = vmul.f32 %v3096_v30, %v3060_v33  ;;  %v3055_v39 = vmul.f32 2.0, %v3049_v36  ;;  %v3168_v8 = vsel %vm3167_vm2, %v3161_v38, 0.0 }
 0x245   :  { %3169 = vadd.xlane.f32.xlu0 %v3168_v8  ;;  %v2873_v42 = vpop.f32.mrb[54].mxu1  ;;  %v3093_v34 = vsub.f32 2.0, %v3087_v40 }
 0x246   :  { %v3061_v45 = vadd.f32 58.5225, %v3055_v39  ;;  %v3050_v19 = vsub.f32 %v2873_v42, %v4479_v2  ;;  %v3814_v48 = vpop.f32.mrb[55].mxu1  ;;  %v3162_v51 = vmul.f32 %v4505_v41, %v3102_v62  ;;  %v3969_v44 = vpop.eup %3968 }
 0x247   :  { %v3088_v49 = vmul.f32 %v3969_v44, %v3076_v9  ;;  %v3099_v3 = vmul.f32 %v3967_v0, %v3093_v34 }
 0x248   :  { %v3103_v57 = vmul.f32 %v3097_v46, %v3061_v45  ;;  %v3056_v43 = vmul.f32 2.0, %v3050_v19  ;;  %v3171_v31 = vsel %vm3167_vm2, %v3162_v51, 0.0 }
 0x249   :  { %3172 = vadd.xlane.f32.xlu0 %v3171_v31  ;;  %v2943_v53 = vpop.f32.mrb[56].mxu1  ;;  %v3094_v59 = vsub.f32 2.0, %v3088_v49 }
 0x24a   :  { %v3062_v5 = vadd.f32 58.5225, %v3056_v43  ;;  %v3051_v58 = vsub.f32 %v2943_v53, %v4487_v11  ;;  %v3821_v60 = vpop.f32.mrb[57].mxu1  ;;  %v3163_v63 = vmul.f32 %v4509_v55, %v3103_v57 }
 0x24b   :  { %v3100_v14 = vmul.f32 %v3969_v44, %v3094_v59 }
 0x24c   :  { %v3104_v2 = vmul.f32 %v3098_v52, %v3062_v5  ;;  %v3057_v56 = vmul.f32 2.0, %v3051_v58  ;;  %v3174_v41 = vsel %vm3167_vm2, %v3163_v63, 0.0 }
 0x24d   :  { %3175 = vadd.xlane.f32.xlu1 %v3174_v41  ;;  %v3013_v4 = vpop.f32.mrb[58].mxu1 }
 0x24e   :  { %v3063_v6 = vadd.f32 58.5225, %v3057_v56  ;;  %v3052_v1 = vsub.f32 %v3013_v4, %v4496_v22  ;;  %v3828_v47 = vpop.f32.mrb[59].mxu1  ;;  %v3164_v7 = vmul.f32 %v4513_v12, %v3104_v2 }
 0x250   :  { %v3105_v13 = vmul.f32 %v3099_v3, %v3063_v6  ;;  %v3058_v9 = vmul.f32 2.0, %v3052_v1  ;;  %v3177_v11 = vsel %vm3167_vm2, %v3164_v7, 0.0 }
 0x251   :  { %3178 = vadd.xlane.f32.xlu1 %v3177_v11 }
 0x252   :  { %v3064_v55 = vadd.f32 58.5225, %v3058_v9  ;;  %v3165_v10 = vmul.f32 %v4517_v24, %v3105_v13 }
 0x254   :  { %v3106_v15 = vmul.f32 %v3100_v14, %v3064_v55  ;;  %v3180_v16 = vsel %vm3167_vm2, %v3165_v10, 0.0 }
 0x255   :  { %3181 = vadd.xlane.f32.xlu0 %v3180_v16 }
 0x256   :  { %v3166_v17 = vmul.f32 %v4520_v29, %v3106_v15 }
 0x258   :  { %v3183_v22 = vsel %vm3167_vm2, %v3166_v17, 0.0 }
 0x259   :  { %3184 = vadd.xlane.f32.xlu1 %v3183_v22 }
 0x2d2   :  { %v3170_v12 = vpop.xlane.xlu0 %3169 }
 0x2d3   :  { %v3187_v18 = vsel %vm3186_vm3, %v3170_v12, 0.0 }
 0x2d4   :  { %v3188_v20 = vrot.slane %v3187_v18, 4 }
 0x2d6   :  { %v3173_v54 = vpop.xlane.xlu0 %3172  ;;  %v3189_v27 = vadd.f32 %v3188_v20, %v3187_v18 }
 0x2d7   :  { %v3194_v23 = vsel %vm3186_vm3, %v3173_v54, 0.0 }
 0x2d8   :  { %v3195_v25 = vrot.slane %v3194_v23, 4  ;;  %v3190_v0 = vrot.slane %v3189_v27, 2 }
 0x2da   :  { %v3196_v21 = vadd.f32 %v3195_v25, %v3194_v23  ;;  %v3176_v24 = vpop.xlane.xlu1 %3175  ;;  %v3191_v8 = vadd.f32 %v3190_v0, %v3189_v27 }
 0x2db   :  { %v3201_v26 = vsel %vm3186_vm3, %v3176_v24, 0.0 }
 0x2dc   :  { %v3202_v28 = vrot.slane %v3201_v26, 4  ;;  %v3197_v61 = vrot.slane %v3196_v21, 2  ;;  %v3192_v44 = vrot.slane %v3191_v8, 1 }
 0x2de   :  { %v3203_v29 = vadd.f32 %v3202_v28, %v3201_v26  ;;  %v3179_v30 = vpop.xlane.xlu1 %3178  ;;  %v3198_v36 = vadd.f32 %v3197_v61, %v3196_v21  ;;  %v3193_v5 = vadd.f32 %v3192_v44, %v3191_v8 }
 0x2df   :  { %v3208_v32 = vsel %vm3186_vm3, %v3179_v30, 0.0 }
 0x2e0   :  { %v3204_v35 = vrot.slane %v3203_v29, 2  ;;  %v3209_v33 = vrot.slane %v3208_v32, 4  ;;  %v3199_v42 = vrot.slane %v3198_v36, 1  ;;  %v3229_v4 = vmul.f32 0.027777778, %v3193_v5 }
 0x2e2   :  { %v3210_v37 = vadd.f32 %v3209_v33, %v3208_v32  ;;  %v3182_v38 = vpop.xlane.xlu0 %3181  ;;  %v3205_v62 = vadd.f32 %v3204_v35, %v3203_v29  ;;  %v3200_v34 = vadd.f32 %v3199_v42, %v3198_v36 }
 0x2e3   :  { %v3215_v39 = vsel %vm3186_vm3, %v3182_v38, 0.0 }
 0x2e4   :  { %v3211_v50 = vrot.slane %v3210_v37, 2  ;;  %v3216_v40 = vrot.slane %v3215_v39, 4  ;;  %v3206_v48 = vrot.slane %v3205_v62, 1  ;;  %v3230_v2 = vmul.f32 0.027777778, %v3200_v34 }
 0x2e6   :  { %v3212_v45 = vadd.f32 %v3211_v50, %v3210_v37  ;;  %v3217_v46 = vadd.f32 %v3216_v40, %v3215_v39  ;;  %v3185_v19 = vpop.xlane.xlu1 %3184  ;;  %v3207_v49 = vadd.f32 %v3206_v48, %v3205_v62  ;;  %v3242_v47 = vsel %vm3241_vm4, %v3230_v2, %v3229_v4 }
 0x2e7   :  { %v3222_v51 = vsel %vm3186_vm3, %v3185_v19, 0.0 }
 0x2e8   :  { %v3213_v57 = vrot.slane %v3212_v45, 1  ;;  %v3218_v43 = vrot.slane %v3217_v46, 2  ;;  %v3223_v31 = vrot.slane %v3222_v51, 4  ;;  %v3231_v3 = vmul.f32 0.027777778, %v3207_v49 }
 0x2ea   :  { %v3219_v52 = vadd.f32 %v3218_v43, %v3217_v46  ;;  %v3224_v53 = vadd.f32 %v3223_v31, %v3222_v51  ;;  %v3214_v58 = vadd.f32 %v3213_v57, %v3212_v45  ;;  %v3244_v13 = vsel %vm3243_vm5, %v3231_v3, %v3242_v47 }
 0x2ec   :  { %v3220_v60 = vrot.slane %v3219_v52, 1  ;;  %v3225_v63 = vrot.slane %v3224_v53, 2  ;;  %v3232_v59 = vmul.f32 0.027777778, %v3214_v58 }
 0x2ee   :  { %v3221_v56 = vadd.f32 %v3220_v60, %v3219_v52  ;;  %v3226_v41 = vadd.f32 %v3225_v63, %v3224_v53  ;;  %v3246_v9 = vsel %vm3245_vm6, %v3232_v59, %v3244_v13 }
 0x2f0   :  { %v3227_v6 = vrot.slane %v3226_v41, 1  ;;  %v3233_v1 = vmul.f32 0.027777778, %v3221_v56 }
 0x2f2   :  { %v3228_v7 = vadd.f32 %v3227_v6, %v3226_v41  ;;  %v3248_v55 = vsel %vm3247_vm7, %v3233_v1, %v3246_v9 }
 0x2f4   :  { %v3234_v11 = vmul.f32 0.027777778, %v3228_v7 }
 0x2f6   :  { %v3250_v14 = vsel %vm3249_vm8, %v3234_v11, %v3248_v55 }
 0x2f7   :  { %3252 = vst [vmem:[%s4560_s4] sm:$0x3f] %v3250_v14 }
 0x2f8   :  { %3257 = vsyncpa [#allocation3], 1 }
 0x2f9   :  { %3258 = vsyncpa [#allocation5], 1 }

</bundles_post_ra>
